<compile_context>
chip_gen: v6e
topology: v6e:2x2x1
jax: 0.10.0
libtpu: 0.0.40
codegen_flags: <defaults>
</compile_context>

<pallas_src>
import functools

import jax
import jax.numpy as jnp
from jax.experimental import pallas as pl
from jax.experimental.pallas import tpu as pltpu


_TM_MAX, _TN_MAX, _TK_MAX = 256, 512, 512  # bf16 tiles; fits v5e/v6e/v7x VMEM


def _round_up(x: int, m: int) -> int:
    return ((x + m - 1) // m) * m


def _pad2(a, rows: int, cols: int):
    r, c = a.shape
    if (r, c) == (rows, cols):
        return a
    return jnp.pad(a, ((0, rows - r), (0, cols - c)))


# ---------------------------------------------------------------------------
# Kernel
# ---------------------------------------------------------------------------
def lora_linear_kernel(x_ref, wT_ref, b_ref, loraBT_ref, loraAT_ref, o_ref,
                       acc_ref, xb_ref):
    """Grid = (M//tm, N//tn, K//tk); axis 2 (K) is the reduction axis."""
    k = pl.program_id(2)

    @pl.when(k == 0)
    def _init():
        acc_ref[...] = jnp.zeros_like(acc_ref)
        xb_ref[...] = jnp.zeros_like(xb_ref)

    x = x_ref[...]                                             # (tm, tk) bf16
    # Frozen base linear: accumulate x @ W.T on the MXU with f32 accumulation.
    acc_ref[...] += jnp.dot(x, wT_ref[...],
                            preferred_element_type=jnp.float32)
    # LoRA down-projection fused into the same K sweep: xb += x @ B.T.
    xb_ref[...] += jnp.dot(x, loraBT_ref[...],
                           preferred_element_type=jnp.float32)

    @pl.when(k == pl.num_programs(2) - 1)
    def _finalize():
        # Tiny rank-r LoRA up-projection epilogue + bias add, all in f32;
        # one lane-dense store per output tile.
        lora = jnp.dot(xb_ref[...], loraAT_ref[...],
                       preferred_element_type=jnp.float32)
        o_ref[...] = (acc_ref[...] + lora + b_ref[...]).astype(o_ref.dtype)


# ---------------------------------------------------------------------------
# One-time parameter preparation (NOT in the hot path)
# ---------------------------------------------------------------------------
def prepare_lora_linear(w, b, lora_A, lora_B, *, compute_dtype=jnp.bfloat16):
    """Transpose + zero-pad + cast the frozen / LoRA weights once.

    Each .T is a full extra HBM pass over the weights, so this must be done
    once per set of weights and cached -- never per forward call.
      w:      (N, K)   -> wT     (Kp, Np) bf16
      b:      (N,)     -> bias   (1,  Np) f32
      lora_B: (r, K)   -> loraBT (Kp, rp) bf16
      lora_A: (N, r)   -> loraAT (rp, Np) f32
    """
    N, K = w.shape
    r = lora_A.shape[1]

    tn = min(_TN_MAX, _round_up(N, 128))
    tk = min(_TK_MAX, _round_up(K, 128))
    Np = _round_up(N, tn)
    Kp = _round_up(K, tk)
    rp = _round_up(r, 128)          # lane-dense LoRA rank (zero-padded)

    wT = _pad2(jnp.asarray(w, compute_dtype).T, Kp, Np)
    loraBT = _pad2(jnp.asarray(lora_B, compute_dtype).T, Kp, rp)
    loraAT = _pad2(jnp.asarray(lora_A, jnp.float32).T, rp, Np)
    bias = _pad2(jnp.asarray(b, jnp.float32).reshape(1, N), 1, Np)
    return wT, bias, loraBT, loraAT


# ---------------------------------------------------------------------------
# Hot path
# ---------------------------------------------------------------------------
def lora_linear_apply(x, wT, bias, loraBT, loraAT, *, out_features):
    """x: (M, in_features) -> (M, out_features), using prepared params."""
    M, K = x.shape
    Kp, Np = wT.shape
    rp = loraAT.shape[0]

    compute_dtype = wT.dtype
    tm = min(_TM_MAX, _round_up(M, 8))
    tn = min(_TN_MAX, Np)
    tk = min(_TK_MAX, Kp)
    Mp = _round_up(M, tm)

    # Only the activations get padded per call (zeros in padded K columns
    # contribute nothing to the reductions).
    xp = _pad2(jnp.asarray(x, compute_dtype), Mp, Kp)

    grid = (Mp // tm, Np // tn, Kp // tk)
    out_dtype = x.dtype

    cost = pl.CostEstimate(
        flops=2 * Mp * Np * Kp + 2 * Mp * Kp * rp + 2 * Mp * rp * Np,
        transcendentals=0,
        bytes_accessed=(xp.size * xp.dtype.itemsize
                        + wT.size * wT.dtype.itemsize
                        + loraBT.size * loraBT.dtype.itemsize
                        + loraAT.size * loraAT.dtype.itemsize
                        + bias.size * bias.dtype.itemsize
                        + Mp * Np * jnp.dtype(out_dtype).itemsize),
    )

    out = pl.pallas_call(
        lora_linear_kernel,
        out_shape=jax.ShapeDtypeStruct((Mp, Np), out_dtype),
        grid_spec=pltpu.PrefetchScalarGridSpec(
            num_scalar_prefetch=0,
            grid=grid,
            in_specs=[
                pl.BlockSpec((tm, tk), lambda i, j, k: (i, k)),   # x
                pl.BlockSpec((tk, tn), lambda i, j, k: (k, j)),   # W.T
                pl.BlockSpec((1, tn), lambda i, j, k: (0, j)),    # bias
                pl.BlockSpec((tk, rp), lambda i, j, k: (k, 0)),   # B.T
                pl.BlockSpec((rp, tn), lambda i, j, k: (0, j)),   # A.T
            ],
            out_specs=pl.BlockSpec((tm, tn), lambda i, j, k: (i, j)),
            scratch_shapes=[
                pltpu.VMEM((tm, tn), jnp.float32),   # base accumulator
                pltpu.VMEM((tm, rp), jnp.float32),   # LoRA xb accumulator
            ],
        ),
        compiler_params=pltpu.CompilerParams(
            dimension_semantics=("parallel", "parallel", "arbitrary"),
        ),
        cost_estimate=cost,
    )(xp, wT, bias, loraBT, loraAT)

    if (Mp, Np) != (M, out_features):
        out = out[:M, :out_features]
    return out


if __name__ == "__main__":
    # Small shapes implied by the module: Linear(in=32, out=32), r=8, batch=8.
    batch, in_features, out_features, r = 8, 32, 32, 8

    key = jax.random.PRNGKey(0)
    kx, kw, kb, ka, kbb = jax.random.split(key, 5)

    x = jax.random.normal(kx, (batch, in_features), dtype=jnp.float32)
    w = jax.random.normal(kw, (out_features, in_features), dtype=jnp.float32) * 0.1
    b = jax.random.normal(kb, (out_features,), dtype=jnp.float32) * 0.1
    lora_A = jax.random.normal(ka, (out_features, r), dtype=jnp.float32) * 0.01
    lora_B = jax.random.normal(kbb, (r, in_features), dtype=jnp.float32) * 0.01

    # One-time weight prep (transpose/pad/bf16-cast): cache outside hot loop.
    params = prepare_lora_linear(w, b, lora_A, lora_B)

    fwd = jax.jit(functools.partial(lora_linear_apply,
                                    out_features=out_features))
    out = fwd(x, *params)
    jax.block_until_ready(out)

    # Reference check in plain JAX (f32). bf16 MXU inputs with f32
    # accumulation -> loose tolerance.
    ref = x @ w.T + b + x @ lora_B.T @ lora_A.T
    assert out.shape == (batch, out_features)
    max_err = jnp.max(jnp.abs(out - ref))
    assert jnp.allclose(out, ref, atol=5e-2, rtol=5e-2), (
        f"mismatch vs reference, max abs err = {max_err}")

    print("KERNEL_OK")
</pallas_src>

<mosaic_0001>
module attributes {stable_mosaic.version = 11 : i64} {
  func.func @lora_linear_kernel(%arg0: i32, %arg1: i32, %arg2: i32, %arg3: memref<8x128xbf16, #tpu.memory_space<vmem>>, %arg4: memref<128x128xbf16, #tpu.memory_space<vmem>>, %arg5: memref<1x128xf32, #tpu.memory_space<vmem>>, %arg6: memref<128x128xbf16, #tpu.memory_space<vmem>>, %arg7: memref<128x128xf32, #tpu.memory_space<vmem>>, %arg8: memref<8x128xf32, #tpu.memory_space<vmem>>, %arg9: memref<8x128xf32, #tpu.memory_space<vmem>>, %arg10: memref<8x128xf32, #tpu.memory_space<vmem>>) attributes {dimension_semantics = [#tpu.dimension_semantics<parallel>, #tpu.dimension_semantics<parallel>, #tpu.dimension_semantics<arbitrary>], iteration_bounds = array<i64: 1, 1, 1>, scalar_prefetch = 0 : i64, scratch_operands = 2 : i64, tpu.core_type = #tpu.core_type<tc>, window_params = [{transform_indices = @transform_0, window_bounds = array<i64: 8, 128>}, {transform_indices = @transform_1, window_bounds = array<i64: 128, 128>}, {transform_indices = @transform_2, window_bounds = array<i64: 1, 128>}, {transform_indices = @transform_3, window_bounds = array<i64: 128, 128>}, {transform_indices = @transform_4, window_bounds = array<i64: 128, 128>}, {transform_indices = @transform_5, window_bounds = array<i64: 8, 128>}]} {
    %c0_i32 = arith.constant 0 : i32
    %0 = arith.cmpi eq, %arg2, %c0_i32 : i32
    %1 = arith.extui %0 : i1 to i32
    %c0_i32_0 = arith.constant 0 : i32
    %2 = arith.cmpi ne, %1, %c0_i32_0 : i32
    scf.if %2 {
      %cst_17 = arith.constant 0.000000e+00 : f32
      %17 = vector.broadcast %cst_17 : f32 to vector<8x128xf32>
      %c0_18 = arith.constant 0 : index
      %c0_19 = arith.constant 0 : index
      %18 = vector.load %arg9[%c0_18, %c0_19] : memref<8x128xf32, #tpu.memory_space<vmem>>, vector<8x128xf32>
      tpu.vector_store %arg9[%c0_18, %c0_19], %17 {strides = array<i32>} : memref<8x128xf32, #tpu.memory_space<vmem>>, vector<8x128xf32>,
      %cst_20 = arith.constant 0.000000e+00 : f32
      %19 = vector.broadcast %cst_20 : f32 to vector<8x128xf32>
      %c0_21 = arith.constant 0 : index
      %c0_22 = arith.constant 0 : index
      %20 = vector.load %arg10[%c0_21, %c0_22] : memref<8x128xf32, #tpu.memory_space<vmem>>, vector<8x128xf32>
      tpu.vector_store %arg10[%c0_21, %c0_22], %19 {strides = array<i32>} : memref<8x128xf32, #tpu.memory_space<vmem>>, vector<8x128xf32>,
    } else {
    }
    %c0 = arith.constant 0 : index
    %c0_1 = arith.constant 0 : index
    %3 = vector.load %arg3[%c0, %c0_1] : memref<8x128xbf16, #tpu.memory_space<vmem>>, vector<8x128xbf16>
    %c0_2 = arith.constant 0 : index
    %c0_3 = arith.constant 0 : index
    %4 = vector.load %arg9[%c0_2, %c0_3] : memref<8x128xf32, #tpu.memory_space<vmem>>, vector<8x128xf32>
    %c0_4 = arith.constant 0 : index
    %c0_5 = arith.constant 0 : index
    %5 = vector.load %arg4[%c0_4, %c0_5] : memref<128x128xbf16, #tpu.memory_space<vmem>>, vector<128x128xbf16>
    %cst = arith.constant dense<0.000000e+00> : vector<8x128xf32>
    %6 = tpu.matmul %3, %5, %cst {dimension_numbers = #tpu.dot_dimension_numbers<[1], [0], [0], [1], [0, 0, 1, 1], [], []>} : vector<8x128xbf16>, vector<128x128xbf16>, vector<8x128xf32> -> vector<8x128xf32>
    %7 = arith.addf %4, %6 : vector<8x128xf32>
    %c0_6 = arith.constant 0 : index
    %c0_7 = arith.constant 0 : index
    %8 = vector.load %arg9[%c0_6, %c0_7] : memref<8x128xf32, #tpu.memory_space<vmem>>, vector<8x128xf32>
    tpu.vector_store %arg9[%c0_6, %c0_7], %7 {strides = array<i32>} : memref<8x128xf32, #tpu.memory_space<vmem>>, vector<8x128xf32>,
    %c0_8 = arith.constant 0 : index
    %c0_9 = arith.constant 0 : index
    %9 = vector.load %arg10[%c0_8, %c0_9] : memref<8x128xf32, #tpu.memory_space<vmem>>, vector<8x128xf32>
    %c0_10 = arith.constant 0 : index
    %c0_11 = arith.constant 0 : index
    %10 = vector.load %arg6[%c0_10, %c0_11] : memref<128x128xbf16, #tpu.memory_space<vmem>>, vector<128x128xbf16>
    %cst_12 = arith.constant dense<0.000000e+00> : vector<8x128xf32>
    %11 = tpu.matmul %3, %10, %cst_12 {dimension_numbers = #tpu.dot_dimension_numbers<[1], [0], [0], [1], [0, 0, 1, 1], [], []>} : vector<8x128xbf16>, vector<128x128xbf16>, vector<8x128xf32> -> vector<8x128xf32>
    %12 = arith.addf %9, %11 : vector<8x128xf32>
    %c0_13 = arith.constant 0 : index
    %c0_14 = arith.constant 0 : index
    %13 = vector.load %arg10[%c0_13, %c0_14] : memref<8x128xf32, #tpu.memory_space<vmem>>, vector<8x128xf32>
    tpu.vector_store %arg10[%c0_13, %c0_14], %12 {strides = array<i32>} : memref<8x128xf32, #tpu.memory_space<vmem>>, vector<8x128xf32>,
    %c0_i32_15 = arith.constant 0 : i32
    %14 = arith.cmpi eq, %arg2, %c0_i32_15 : i32
    %15 = arith.extui %14 : i1 to i32
    %c0_i32_16 = arith.constant 0 : i32
    %16 = arith.cmpi ne, %15, %c0_i32_16 : i32
    scf.if %16 {
      %c0_17 = arith.constant 0 : index
      %c0_18 = arith.constant 0 : index
      %17 = vector.load %arg10[%c0_17, %c0_18] : memref<8x128xf32, #tpu.memory_space<vmem>>, vector<8x128xf32>
      %c0_19 = arith.constant 0 : index
      %c0_20 = arith.constant 0 : index
      %18 = vector.load %arg7[%c0_19, %c0_20] : memref<128x128xf32, #tpu.memory_space<vmem>>, vector<128x128xf32>
      %cst_21 = arith.constant dense<0.000000e+00> : vector<8x128xf32>
      %19 = tpu.matmul %17, %18, %cst_21 {dimension_numbers = #tpu.dot_dimension_numbers<[1], [0], [0], [1], [0, 0, 1, 1], [], []>} : vector<8x128xf32>, vector<128x128xf32>, vector<8x128xf32> -> vector<8x128xf32>
      %c0_22 = arith.constant 0 : index
      %c0_23 = arith.constant 0 : index
      %20 = vector.load %arg9[%c0_22, %c0_23] : memref<8x128xf32, #tpu.memory_space<vmem>>, vector<8x128xf32>
      %21 = arith.addf %20, %19 : vector<8x128xf32>
      %c0_24 = arith.constant 0 : index
      %c0_25 = arith.constant 0 : index
      %22 = vector.load %arg5[%c0_24, %c0_25] : memref<1x128xf32, #tpu.memory_space<vmem>>, vector<1x128xf32>
      %23 = vector.broadcast %22 : vector<1x128xf32> to vector<8x128xf32>
      %24 = arith.addf %21, %23 : vector<8x128xf32>
      %c0_26 = arith.constant 0 : index
      %c0_27 = arith.constant 0 : index
      %25 = vector.load %arg8[%c0_26, %c0_27] : memref<8x128xf32, #tpu.memory_space<vmem>>, vector<8x128xf32>
      tpu.vector_store %arg8[%c0_26, %c0_27], %24 {strides = array<i32>} : memref<8x128xf32, #tpu.memory_space<vmem>>, vector<8x128xf32>,
    } else {
    }
    return
  }
  func.func @transform_0(%arg0: i32, %arg1: i32, %arg2: i32) -> (i32, i32) {
    %c0_i32 = arith.constant 0 : i32
    return %arg0, %arg2 : i32, i32
  }
  func.func @transform_1(%arg0: i32, %arg1: i32, %arg2: i32) -> (i32, i32) {
    %c0_i32 = arith.constant 0 : i32
    return %arg2, %arg1 : i32, i32
  }
  func.func @transform_2(%arg0: i32, %arg1: i32, %arg2: i32) -> (i32, i32) {
    %c0_i32 = arith.constant 0 : i32
    %c0_i32_0 = arith.constant 0 : i32
    return %c0_i32, %arg1 : i32, i32
  }
  func.func @transform_3(%arg0: i32, %arg1: i32, %arg2: i32) -> (i32, i32) {
    %c0_i32 = arith.constant 0 : i32
    %c0_i32_0 = arith.constant 0 : i32
    return %arg2, %c0_i32 : i32, i32
  }
  func.func @transform_4(%arg0: i32, %arg1: i32, %arg2: i32) -> (i32, i32) {
    %c0_i32 = arith.constant 0 : i32
    %c0_i32_0 = arith.constant 0 : i32
    return %c0_i32, %arg1 : i32, i32
  }
  func.func @transform_5(%arg0: i32, %arg1: i32, %arg2: i32) -> (i32, i32) {
    %c0_i32 = arith.constant 0 : i32
    return %arg0, %arg1 : i32, i32
  }
}

</mosaic_0001>

<bundles_post_ra>
// kernel: lora_linear_apply.1
= control target key start
LH: loop header
LB: loop body
LE: loop exit
PB: predicated region body
PF: predicated region fallthrough
CT: control target
= control target key end

     0   :  { %10 = vsyncpa [#allocation5], 0  ;;  %s736_s0 = inlined_call_operand.vmem [shape: bf16[8,128], index: 0, kind: input, shape index: {}]   ;;  %s737_s1 = inlined_call_operand.hbm [shape: bf16[128,128], index: 1, kind: input, shape index: {}]   ;;  %s738_s2 = inlined_call_operand.vmem [shape: f32[1,128], index: 2, kind: input, shape index: {}]   ;;  %s739_s3 = inlined_call_operand.hbm [shape: bf16[128,128], index: 3, kind: input, shape index: {}]   ;;  %s740_s4 = inlined_call_operand.hbm [shape: f32[128,128], index: 4, kind: input, shape index: {}]   ;;  %s741_s5 = inlined_call_operand.hbm [shape: f32[8,128], index: 5, kind: output, shape index: {}]  }
   0x1   :  { %11 = vsyncpa [#allocation8], 0 }
   0x2   :  { %12 = vsyncpa [#allocation6], 0  ;;  %s640_s18 = smov [#allocation7]   ;;  %s641_s20 = smov [#allocation4]  }
   0x3   :  { %s34_s19 = sshll.u32 %s640_s18, 4  ;;  %s20_s21 = sshll.u32 %s641_s20, 4  ;;  %s35_s19 = int_to_ptr.vmem [resolvable:$true] %s34_s19  ;;  %s21_s21 = int_to_ptr.vmem [resolvable:$true] %s20_s21 }
   0x4   :  { %s562_s22 = scalar_lea.vmem %s35_s19, 1024  ;;  %p567_p1 = scmp.lt.s32.totalorder %s35_s19, %s35_s19 }
   0x5   :  { %p563_p0 = scmp.ne.s32.totalorder %s35_s19, %s562_s22  ;;  %p568_p2 = scmp.lt.s32.totalorder %s562_s22, %s562_s22 }
   0x7   :  { %p569_p3 = por %p568_p2, %p567_p1 }
   0x9   :  { %p570_p4 = pnand %p569_p3, %p563_p0 }
   0xb   :  { %573 = shalt.err (!%p570_p4)
}
   0xc   :  { %s642_s23 = smov 64   ;;  %s643_s24 = smov 4  }
   0xd   :  { %40 = dma.hbm_to_vmem [thread:$0]  %s739_s3, 1024, %s35_s19, [#allocation8], %s642_s23, %s642_s23, %s643_s24  }
   0xe   :  { %s582_s27 = scalar_lea.vmem %s21_s21, 1024  ;;  %p587_p6 = scmp.lt.s32.totalorder %s21_s21, %s21_s21 }
   0xf   :  { %p583_p5 = scmp.ne.s32.totalorder %s21_s21, %s582_s27  ;;  %p588_p7 = scmp.lt.s32.totalorder %s582_s27, %s582_s27 }
  0x11   :  { %p589_p8 = por %p588_p7, %p587_p6 }
  0x13   :  { %p590_p9 = pnand %p589_p8, %p583_p5 }
  0x15   :  { %593 = shalt.err (!%p590_p9)
}
  0x16   :  { %26 = dma.hbm_to_vmem [thread:$0]  %s737_s1, 1024, %s21_s21, [#allocation5], %s642_s23, %s642_s23, %s643_s24  }
  0x17   :  { %s644_s30 = smov [#allocation9]  }
  0x18   :  { %s46_s6 = sshll.u32 %s644_s30, 4  ;;  %s47_s6 = int_to_ptr.vmem [resolvable:$true] %s46_s6 }
  0x19   :  { %s602_s7 = scalar_lea.vmem %s47_s6, 2048  ;;  %p607_p11 = scmp.lt.s32.totalorder %s47_s6, %s47_s6 }
  0x1a   :  { %p603_p10 = scmp.ne.s32.totalorder %s47_s6, %s602_s7  ;;  %p608_p12 = scmp.lt.s32.totalorder %s602_s7, %s602_s7 }
  0x1c   :  { %p609_p13 = por %p608_p12, %p607_p11 }
  0x1e   :  { %p610_p0 = pnand %p609_p13, %p603_p10 }
  0x20   :  { %613 = shalt.err (!%p610_p0)
}
  0x21   :  { %s645_s3 = smov 128   ;;  %s646_s8 = smov 8  }
  0x22   :  { %52 = dma.hbm_to_vmem [thread:$0]  %s740_s4, 2048, %s47_s6, [#allocation8], %s645_s3, %s645_s3, %s646_s8  }
  0x23   :  { %634 = dma.done.wait [#allocation5], 1024  }
  0x24   :  { %635 = vsyncadd [#allocation5], 4294966272 }
  0x25   :  { %636 = dma.done.wait [#allocation8], 3072  }
  0x26   :  { %637 = vsyncadd [#allocation8], 4294964224  ;;  %v647_v0 = vmov 0.0   ;;  %vm648_vm0 = vmmov 0   ;;  %v538_v1 = vld [vmem:[#allocation7 + $0x38] sm:$0xff]   ;;  %v539_v2 = vld [vmem:[#allocation7 + $0x30] sm:$0xff]  }
  0x27   :  { %473 = vmatprep.subr.bf16.mxu1 %v647_v0  ;;  %489 = vmatprep.mubr.msk.bf16.mxu1 %vm648_vm0, %v647_v0  ;;  %v540_v3 = vld [vmem:[#allocation7 + $0x28] sm:$0xff]   ;;  %v546_v4 = vld [vmem:[#allocation4 + $0x38] sm:$0xff]   ;;  %v541_v5 = vld [vmem:[#allocation7 + $0x20] sm:$0xff]   ;;  %s649_s12 = smov [#allocation10]  }
  0x28   :  { %453 = vmatprep.subr.bf16.mxu0 %v647_v0  ;;  %469 = vmatprep.mubr.msk.bf16.mxu0 %vm648_vm0, %v647_v0  ;;  %v547_v6 = vld [vmem:[#allocation4 + $0x30] sm:$0xff]   ;;  %v542_v7 = vld [vmem:[#allocation7 + $0x18] sm:$0xff]   ;;  %v548_v8 = vld [vmem:[#allocation4 + $0x28] sm:$0xff]   ;;  %s391_s13 = sshll.u32 %s649_s12, 4  ;;  %s392_s13 = int_to_ptr.vmem [resolvable:$true] %s391_s13 }
  0x29   :  { %474 = vmatpush3.bf16.msra.mxu1 %v538_v1  ;;  %454 = vmatpush3.bf16.msra.mxu0 %v546_v4  ;;  %v543_v9 = vld [vmem:[#allocation7 + $0x10] sm:$0xff]   ;;  %v549_v10 = vld [vmem:[#allocation4 + $0x20] sm:$0xff]   ;;  %v544_v11 = vld [vmem:[#allocation7 + $0x8] sm:$0xff]   ;;  %s614_s14 = scalar_lea.vmem %s392_s13, 128  ;;  %p619_p2 = scmp.lt.s32.totalorder %s392_s13, %s392_s13 }
  0x2a   :  { %475 = vmatprep.subr.bf16.mxu1 %v647_v0  ;;  %455 = vmatprep.subr.bf16.mxu0 %v647_v0  ;;  %v550_v12 = vld [vmem:[#allocation4 + $0x18] sm:$0xff]   ;;  %v545_v13 = vld [vmem:[#allocation7] sm:$0xff]   ;;  %v551_v14 = vld [vmem:[#allocation4 + $0x10] sm:$0xff]   ;;  %p615_p1 = scmp.ne.s32.totalorder %s392_s13, %s614_s14  ;;  %p620_p3 = scmp.lt.s32.totalorder %s614_s14, %s614_s14 }
  0x2b   :  { %v69_v15 = vld [vmem:[%s736_s0] sm:$0xf]  ;;  %v552_v16 = vld [vmem:[#allocation4 + $0x8] sm:$0xff]   ;;  %v303_v18 = vld [vmem:[#allocation9 + $0x78] sm:$0xff] }
  0x2c   :  { %v553_v17 = vld [vmem:[#allocation4] sm:$0xff]   ;;  %v302_v19 = vld [vmem:[#allocation9 + $0x70] sm:$0xff]  ;;  %v301_v20 = vld [vmem:[#allocation9 + $0x68] sm:$0xff]  ;;  %p621_p4 = por %p620_p3, %p619_p2 }
  0x2d   :  { %476 = vmatpush3.bf16.msra.mxu1 %v539_v2  ;;  %456 = vmatpush3.bf16.msra.mxu0 %v547_v6  ;;  %v300_v21 = vld [vmem:[#allocation9 + $0x60] sm:$0xff]  ;;  %v299_v22 = vld [vmem:[#allocation9 + $0x58] sm:$0xff]  ;;  %v298_v23 = vld [vmem:[#allocation9 + $0x50] sm:$0xff] }
  0x2e   :  { %477 = vmatprep.subr.bf16.mxu1 %v647_v0  ;;  %457 = vmatprep.subr.bf16.mxu0 %v647_v0  ;;  %v297_v24 = vld [vmem:[#allocation9 + $0x48] sm:$0xff]  ;;  %v296_v25 = vld [vmem:[#allocation9 + $0x40] sm:$0xff]  ;;  %v295_v26 = vld [vmem:[#allocation9 + $0x38] sm:$0xff]  ;;  %p622_p5 = pnand %p621_p4, %p615_p1 }
  0x2f   :  { %v294_v27 = vld [vmem:[#allocation9 + $0x30] sm:$0xff]  ;;  %v293_v28 = vld [vmem:[#allocation9 + $0x28] sm:$0xff]  ;;  %v292_v29 = vld [vmem:[#allocation9 + $0x20] sm:$0xff] }
  0x30   :  { %v291_v30 = vld [vmem:[#allocation9 + $0x18] sm:$0xff]  ;;  %v290_v31 = vld [vmem:[#allocation9 + $0x10] sm:$0xff]  ;;  %v289_v32 = vld [vmem:[#allocation9 + $0x8] sm:$0xff] }
  0x31   :  { %478 = vmatpush3.bf16.msra.mxu1 %v540_v3  ;;  %458 = vmatpush3.bf16.msra.mxu0 %v548_v8  ;;  %v288_v33 = vld [vmem:[#allocation9] sm:$0xff] }
  0x32   :  { %479 = vmatprep.subr.bf16.mxu1 %v647_v0  ;;  %459 = vmatprep.subr.bf16.mxu0 %v647_v0  ;;  %v417_v43 = vld [vmem:[%s738_s2] ss:$0 sm:$0xff] }
  0x35   :  { %480 = vmatpush3.bf16.msra.mxu1 %v541_v5  ;;  %460 = vmatpush3.bf16.msra.mxu0 %v549_v10 }
  0x36   :  { %481 = vmatprep.subr.bf16.mxu1 %v647_v0  ;;  %461 = vmatprep.subr.bf16.mxu0 %v647_v0 }
  0x39   :  { %482 = vmatpush3.bf16.msra.mxu1 %v542_v7  ;;  %462 = vmatpush3.bf16.msra.mxu0 %v550_v12 }
  0x3a   :  { %483 = vmatprep.subr.bf16.mxu1 %v647_v0  ;;  %463 = vmatprep.subr.bf16.mxu0 %v647_v0 }
  0x3d   :  { %484 = vmatpush3.bf16.msra.mxu1 %v543_v9  ;;  %464 = vmatpush3.bf16.msra.mxu0 %v551_v14 }
  0x3e   :  { %485 = vmatprep.subr.bf16.mxu1 %v647_v0  ;;  %465 = vmatprep.subr.bf16.mxu0 %v647_v0 }
  0x41   :  { %486 = vmatpush3.bf16.msra.mxu1 %v544_v11  ;;  %466 = vmatpush3.bf16.msra.mxu0 %v552_v16 }
  0x42   :  { %487 = vmatprep.subr.bf16.mxu1 %v647_v0  ;;  %467 = vmatprep.subr.bf16.mxu0 %v647_v0 }
  0x45   :  { %488 = vmatpush3.bf16.msra.mxu1 %v545_v13  ;;  %468 = vmatpush3.bf16.msra.mxu0 %v553_v17 }
  0x46   :  { %493 = vmatprep.subr.mxu0 %v647_v0 }
  0x48   :  { %490 = vmatmul.mubr.bf16.vlgmr.msra.gmra.mxu1 %v69_v15  ;;  %470 = vmatmul.mubr.bf16.vlgmr.msra.gmra.mxu0 %v69_v15 }
  0x49   :  { %494 = vmatpush3.msra.mxu0 %v303_v18  ;;  %525 = vmatprep.mubr.msk.f32.mxu0 %vm648_vm0, %v647_v0 }
  0x4a   :  { %495 = vmatprep.subr.mxu0 %v647_v0 }
  0x4b   :  { %496 = vmatpush3.msra.mxu0 %v302_v19 }
  0x4c   :  { %497 = vmatprep.subr.mxu0 %v647_v0 }
  0x4d   :  { %498 = vmatpush3.msra.mxu0 %v301_v20 }
  0x4e   :  { %499 = vmatprep.subr.mxu0 %v647_v0 }
  0x4f   :  { %500 = vmatpush3.msra.mxu0 %v300_v21 }
  0x50   :  { %501 = vmatprep.subr.mxu0 %v647_v0 }
  0x51   :  { %502 = vmatpush3.msra.mxu0 %v299_v22 }
  0x52   :  { %503 = vmatprep.subr.mxu0 %v647_v0 }
  0x53   :  { %504 = vmatpush3.msra.mxu0 %v298_v23 }
  0x54   :  { %505 = vmatprep.subr.mxu0 %v647_v0 }
  0x55   :  { %506 = vmatpush3.msra.mxu0 %v297_v24 }
  0x56   :  { %507 = vmatprep.subr.mxu0 %v647_v0 }
  0x57   :  { %508 = vmatpush3.msra.mxu0 %v296_v25 }
  0x58   :  { %509 = vmatprep.subr.mxu0 %v647_v0 }
  0x59   :  { %510 = vmatpush3.msra.mxu0 %v295_v26 }
  0x5a   :  { %511 = vmatprep.subr.mxu0 %v647_v0 }
  0x5b   :  { %512 = vmatpush3.msra.mxu0 %v294_v27 }
  0x5c   :  { %513 = vmatprep.subr.mxu0 %v647_v0 }
  0x5d   :  { %514 = vmatpush3.msra.mxu0 %v293_v28 }
  0x5e   :  { %515 = vmatprep.subr.mxu0 %v647_v0 }
  0x5f   :  { %516 = vmatpush3.msra.mxu0 %v292_v29 }
  0x60   :  { %517 = vmatprep.subr.mxu0 %v647_v0 }
  0x61   :  { %518 = vmatpush3.msra.mxu0 %v291_v30 }
  0x62   :  { %519 = vmatprep.subr.mxu0 %v647_v0 }
  0x63   :  { %520 = vmatpush3.msra.mxu0 %v290_v31 }
  0x64   :  { %521 = vmatprep.subr.mxu0 %v647_v0 }
  0x65   :  { %522 = vmatpush3.msra.mxu0 %v289_v32 }
  0x66   :  { %523 = vmatprep.subr.mxu0 %v647_v0 }
  0x67   :  { %524 = vmatpush3.msra.mxu0 %v288_v33 }
 0x108   :  { %v276_v34 = vpop.f32.mrf.mxu1  ;;  %v169_v38 = vpop.f32.mrf.mxu0 }
 0x109   :  { %526 = vmatmul.mubr.f32.vlgmr.msra.gmra.mxu0 %v276_v34 }
 0x10a   :  { %v491_v35 = vpop.f32.mrf.mxu1  ;;  %v471_v39 = vpop.f32.mrf.mxu0 }
 0x10c   :  { %v279_v36 = vpop.f32.mrf.mxu1  ;;  %v172_v40 = vpop.f32.mrf.mxu0 }
 0x10e   :  { %v492_v37 = vpop.f32.mrf.mxu1  ;;  %v472_v41 = vpop.f32.mrf.mxu0 }
 0x1c9   :  { %v370_v42 = vpop.f32.mrf.mxu0 }
 0x1ca   :  { %v375_v44 = vadd.f32 %v370_v42, %v169_v38 }
 0x1cb   :  { %v527_v45 = vpop.f32.mrf.mxu0 }
 0x1cc   :  { %v383_v46 = vadd.f32 %v417_v43, %v375_v44 }
 0x1ce   :  { %384 = vst [vmem:[#allocation10] sm:$0xff] %v383_v46 }
 0x1cf   :  { %625 = shalt.err (!%p622_p5)
}
 0x1d0   :  { %394 = dma.vmem_to_hbm [thread:$0]  %s392_s13, 128, %s741_s5, [#allocation6]  }
 0x1d1   :  { %638 = dma.done.wait [#allocation6], 128  }
 0x1d2   :  { %639 = vsyncadd [#allocation6], 4294967168 }
 0x1d3   :  { %398 = vsyncpa [#allocation5], 1 }
 0x1d4   :  { %399 = vsyncpa [#allocation8], 1 }
 0x1d5   :  { %400 = vsyncpa [#allocation6], 1 }

</bundles_post_ra>
